<compile_context>
chip_gen: v7x
topology: tpu7x:2x2x1
jax: 0.10.0
libtpu: 0.0.40
codegen_flags: <defaults>
</compile_context>

<pallas_src>
import functools

import jax
import jax.numpy as jnp
from jax.experimental import pallas as pl
from jax.experimental.pallas import tpu as pltpu


# ---------------------------------------------------------------------------
# Deterministic parameter init (mirrors orthogonal_init: orthogonal weight, 0 bias)
# ---------------------------------------------------------------------------
def orthogonal(key, shape, gain=1.0, dtype=jnp.float32):
    """JAX equivalent of torch.nn.init.orthogonal_ for a 2-D (out, in) weight."""
    rows, cols = shape
    flat = jax.random.normal(key, (max(rows, cols), min(rows, cols)), dtype=jnp.float32)
    q, r = jnp.linalg.qr(flat)
    d = jnp.sign(jnp.diagonal(r))
    q = q * d[None, :]
    if rows < cols:
        q = q.T
    return (gain * q[:rows, :cols]).astype(dtype)


def init_critic_params(key, state_dim, hidden_width):
    k1, k2, k3 = jax.random.split(key, 3)
    # PyTorch Linear weight is (out, in); store transposed (in, out) so the
    # kernel computes s @ W + b directly on the MXU.
    w1 = orthogonal(k1, (hidden_width, state_dim)).T        # (state_dim, hidden)
    w2 = orthogonal(k2, (hidden_width, hidden_width)).T     # (hidden, hidden)
    w3 = orthogonal(k3, (1, hidden_width)).T                # (hidden, 1)
    b1 = jnp.zeros((1, hidden_width), jnp.float32)
    b2 = jnp.zeros((1, hidden_width), jnp.float32)
    b3 = jnp.zeros((1, 1), jnp.float32)
    return dict(w1=w1, b1=b1, w2=w2, b2=b2, w3=w3, b3=b3)


# ---------------------------------------------------------------------------
# Kernel: one batch tile of the full forward pass
#   s_ref  : (TB, S)  compute dtype (f32 or bf16)
#   w1_ref : (S, H)   compute dtype     b1_ref : (1, H) f32
#   w2_ref : (H, H)   compute dtype     b2_ref : (1, H) f32
#   w3_ref : (1, H)   f32 (VPU path)    b3_ref : (1,)   f32 in SMEM
#   o_ref  : (1, TB)  f32 -- batch on the lane axis (lane-dense store)
# ---------------------------------------------------------------------------
def critic_kernel(s_ref, w1_ref, b1_ref, w2_ref, b2_ref, w3_ref, b3_ref, o_ref,
                  *, use_tanh):
    act = jnp.tanh if use_tanh else (lambda x: jnp.maximum(x, 0.0))
    s = s_ref[...]
    # fc1 + act (MXU matmul, f32 accumulate; tanh goes to the EUP, relu to VPU)
    h1 = act(
        jnp.dot(s, w1_ref[...], preferred_element_type=jnp.float32) + b1_ref[...]
    )
    # fc2 + act (cast activation back to the matmul dtype for the MXU)
    h2 = act(
        jnp.dot(h1.astype(s.dtype), w2_ref[...], preferred_element_type=jnp.float32)
        + b2_ref[...]
    )
    # fc3 (value head, out_features = 1): VPU multiply + lane (XLU) reduce
    # instead of an N=1 MXU matmul that would waste an entire result column.
    v = jnp.sum(h2 * w3_ref[...], axis=-1) + b3_ref[0]          # (TB,) f32
    # Lane-dense store: batch on the 128-lane axis -> unmasked vst.
    o_ref[...] = v.reshape(o_ref.shape).astype(o_ref.dtype)


def _round_up(x, m):
    return ((x + m - 1) // m) * m


@functools.partial(jax.jit, static_argnames=("compute_dtype", "block_b", "use_tanh"))
def critic_forward(s, params, *, compute_dtype=jnp.float32, block_b=1024, use_tanh=True):
    B, S = s.shape
    H = params["w1"].shape[1]

    # Batch tile: multiple of 128 so the per-tile output row is lane-dense,
    # capped at block_b.  VMEM use (2 buffers of (TB,S) + resident weights) is
    # well under the 32 MiB default scoped limit even on v7x (64 MiB physical).
    TB = min(_round_up(block_b, 128), _round_up(B, 128))
    n_tiles = pl.cdiv(B, TB)
    B_pad = n_tiles * TB

    s_p = s.astype(compute_dtype)
    if B_pad != B:
        # Zero-pad the ragged tail; padded rows are sliced off after the call.
        s_p = jnp.pad(s_p, ((0, B_pad - B), (0, 0)))

    w1 = params["w1"].astype(compute_dtype)
    w2 = params["w2"].astype(compute_dtype)
    w3 = params["w3"].reshape(1, H).astype(jnp.float32)   # row vector (VPU path)
    b1 = params["b1"].astype(jnp.float32)
    b2 = params["b2"].astype(jnp.float32)
    b3 = params["b3"].reshape(1).astype(jnp.float32)      # SMEM scalar

    itemsize = jnp.dtype(compute_dtype).itemsize
    cost = pl.CostEstimate(
        flops=int(2 * B_pad * (S * H + H * H + H)),
        transcendentals=int(2 * B_pad * H) if use_tanh else 0,
        bytes_accessed=int(
            B_pad * S * itemsize               # s stream
            + (S * H + H * H) * itemsize       # w1, w2
            + (3 * H + 1) * 4                  # b1, b2, w3, b3
            + B_pad * 4                        # output
        ),
    )

    resident = lambda shape: pl.BlockSpec(shape, lambda i: (0, 0))

    out = pl.pallas_call(
        functools.partial(critic_kernel, use_tanh=use_tanh),
        out_shape=jax.ShapeDtypeStruct((1, B_pad), jnp.float32),
        grid=(n_tiles,),
        in_specs=[
            pl.BlockSpec((TB, S), lambda i: (i, 0)),             # s: tiled batch
            resident((S, H)),                                    # w1 (VMEM-resident)
            resident((1, H)),                                    # b1
            resident((H, H)),                                    # w2
            resident((1, H)),                                    # b2
            resident((1, H)),                                    # w3 row
            pl.BlockSpec(memory_space=pltpu.MemorySpace.SMEM),   # b3 scalar
        ],
        out_specs=pl.BlockSpec((1, TB), lambda i: (0, i)),       # lane-dense row
        compiler_params=pltpu.CompilerParams(
            # Independent batch tiles -> shard across both TensorCores on v7x.
            dimension_semantics=("parallel",),
        ),
        cost_estimate=cost,
    )(s_p, w1, b1, w2, b2, w3, b3)

    # (1, B_pad) row -> (B, 1) column (PyTorch layout), dropping padded rows.
    return out.reshape(B_pad, 1)[:B]


# ---------------------------------------------------------------------------
# Pure-JAX reference (same dtype policy) for correctness checks
# ---------------------------------------------------------------------------
def critic_ref(s, p, compute_dtype=jnp.float32, use_tanh=True):
    cd = compute_dtype
    act = jnp.tanh if use_tanh else jax.nn.relu
    h1 = act(
        jnp.dot(s.astype(cd), p["w1"].astype(cd), preferred_element_type=jnp.float32)
        + p["b1"]
    )
    h2 = act(
        jnp.dot(h1.astype(cd), p["w2"].astype(cd), preferred_element_type=jnp.float32)
        + p["b2"]
    )
    return jnp.sum(h2 * p["w3"].reshape(1, -1), axis=-1, keepdims=True) + p["b3"]


if __name__ == "__main__":
    key = jax.random.PRNGKey(0)
    k_params, k_state = jax.random.split(key)

    batch = 8
    state_dim = 12
    hidden_width = 32

    params = init_critic_params(k_params, state_dim, hidden_width)
    s = jax.random.normal(k_state, (batch, state_dim), dtype=jnp.float32)

    # f32 / tanh path: matches the PyTorch module's semantics (use_tanh=1).
    v = critic_forward(s, params)
    jax.block_until_ready(v)
    v_ref = critic_ref(s, params)
    assert v.shape == (batch, 1)
    assert jnp.allclose(v, v_ref, atol=1e-4, rtol=1e-4), "f32 tanh mismatch vs reference"

    # f32 / relu path (use_tanh=0 in the PyTorch args).
    v_relu = critic_forward(s, params, use_tanh=False)
    jax.block_until_ready(v_relu)
    v_relu_ref = critic_ref(s, params, use_tanh=False)
    assert jnp.allclose(v_relu, v_relu_ref, atol=1e-4, rtol=1e-4), "f32 relu mismatch"

    # bf16 matmul path (native MXU dtype on v6e/v7x; halves HBM bytes for s/w1/w2).
    v_bf16 = critic_forward(s, params, compute_dtype=jnp.bfloat16)
    jax.block_until_ready(v_bf16)
    assert v_bf16.shape == (batch, 1)
    assert bool(jnp.all(jnp.isfinite(v_bf16)))
    assert jnp.allclose(v_bf16, v_ref, atol=1e-1, rtol=1e-1), "bf16 path diverged"

    print("KERNEL_OK")
</pallas_src>

<mosaic_0001>
module attributes {stable_mosaic.version = 11 : i64} {
  func.func @critic_kernel(%arg0: i32, %arg1: memref<128x12xf32, #tpu.memory_space<vmem>>, %arg2: memref<12x32xf32, #tpu.memory_space<vmem>>, %arg3: memref<1x32xf32, #tpu.memory_space<vmem>>, %arg4: memref<32x32xf32, #tpu.memory_space<vmem>>, %arg5: memref<1x32xf32, #tpu.memory_space<vmem>>, %arg6: memref<1x32xf32, #tpu.memory_space<vmem>>, %arg7: memref<1xf32, #tpu.memory_space<smem>>, %arg8: memref<1x128xf32, #tpu.memory_space<vmem>>) attributes {dimension_semantics = [#tpu.dimension_semantics<parallel>], iteration_bounds = array<i64: 1>, scalar_prefetch = 0 : i64, scratch_operands = 0 : i64, tpu.core_type = #tpu.core_type<tc>, window_params = [{transform_indices = @transform_0, window_bounds = array<i64: 128, 12>}, {pipeline_mode = #tpu.pipeline_mode<synchronous>, transform_indices = @transform_1, window_bounds = array<i64: 12, 32>}, {pipeline_mode = #tpu.pipeline_mode<synchronous>, transform_indices = @transform_2, window_bounds = array<i64: 1, 32>}, {pipeline_mode = #tpu.pipeline_mode<synchronous>, transform_indices = @transform_3, window_bounds = array<i64: 32, 32>}, {pipeline_mode = #tpu.pipeline_mode<synchronous>, transform_indices = @transform_4, window_bounds = array<i64: 1, 32>}, {pipeline_mode = #tpu.pipeline_mode<synchronous>, transform_indices = @transform_5, window_bounds = array<i64: 1, 32>}, {transform_indices = @transform_6, window_bounds = array<i64: 1>}, {transform_indices = @transform_7, window_bounds = array<i64: 1, 128>}]} {
    %c0 = arith.constant 0 : index
    %c0_0 = arith.constant 0 : index
    %0 = vector.load %arg1[%c0, %c0_0] : memref<128x12xf32, #tpu.memory_space<vmem>>, vector<128x12xf32>
    %c0_1 = arith.constant 0 : index
    %c0_2 = arith.constant 0 : index
    %1 = vector.load %arg2[%c0_1, %c0_2] : memref<12x32xf32, #tpu.memory_space<vmem>>, vector<12x32xf32>
    %cst = arith.constant dense<0.000000e+00> : vector<128x32xf32>
    %2 = tpu.matmul %0, %1, %cst {dimension_numbers = #tpu.dot_dimension_numbers<[1], [0], [0], [1], [0, 0, 1, 1], [], []>} : vector<128x12xf32>, vector<12x32xf32>, vector<128x32xf32> -> vector<128x32xf32>
    %c0_3 = arith.constant 0 : index
    %c0_4 = arith.constant 0 : index
    %3 = vector.load %arg3[%c0_3, %c0_4] : memref<1x32xf32, #tpu.memory_space<vmem>>, vector<1x32xf32>
    %4 = vector.broadcast %3 : vector<1x32xf32> to vector<128x32xf32>
    %5 = arith.addf %2, %4 : vector<128x32xf32>
    %6 = math.tanh %5 : vector<128x32xf32>
    %c0_5 = arith.constant 0 : index
    %c0_6 = arith.constant 0 : index
    %7 = vector.load %arg4[%c0_5, %c0_6] : memref<32x32xf32, #tpu.memory_space<vmem>>, vector<32x32xf32>
    %cst_7 = arith.constant dense<0.000000e+00> : vector<128x32xf32>
    %8 = tpu.matmul %6, %7, %cst_7 {dimension_numbers = #tpu.dot_dimension_numbers<[1], [0], [0], [1], [0, 0, 1, 1], [], []>} : vector<128x32xf32>, vector<32x32xf32>, vector<128x32xf32> -> vector<128x32xf32>
    %c0_8 = arith.constant 0 : index
    %c0_9 = arith.constant 0 : index
    %9 = vector.load %arg5[%c0_8, %c0_9] : memref<1x32xf32, #tpu.memory_space<vmem>>, vector<1x32xf32>
    %10 = vector.broadcast %9 : vector<1x32xf32> to vector<128x32xf32>
    %11 = arith.addf %8, %10 : vector<128x32xf32>
    %12 = math.tanh %11 : vector<128x32xf32>
    %c0_10 = arith.constant 0 : index
    %c0_11 = arith.constant 0 : index
    %13 = vector.load %arg6[%c0_10, %c0_11] : memref<1x32xf32, #tpu.memory_space<vmem>>, vector<1x32xf32>
    %14 = vector.broadcast %13 : vector<1x32xf32> to vector<128x32xf32>
    %15 = arith.mulf %12, %14 : vector<128x32xf32>
    %cst_12 = arith.constant dense<0.000000e+00> : vector<128xf32>
    %16 = vector.multi_reduction <add>, %15, %cst_12 [1] : vector<128x32xf32> to vector<128xf32>
    %c0_13 = arith.constant 0 : index
    %17 = memref.load %arg7[%c0_13] : memref<1xf32, #tpu.memory_space<smem>>
    %18 = vector.broadcast %17 : f32 to vector<128xf32>
    %19 = arith.addf %16, %18 : vector<128xf32>
    %20 = vector.shape_cast %19 : vector<128xf32> to vector<1x128xf32>
    %c0_14 = arith.constant 0 : index
    %c0_15 = arith.constant 0 : index
    %21 = vector.load %arg8[%c0_14, %c0_15] : memref<1x128xf32, #tpu.memory_space<vmem>>, vector<1x128xf32>
    tpu.vector_store %arg8[%c0_14, %c0_15], %20 {strides = array<i32>} : memref<1x128xf32, #tpu.memory_space<vmem>>, vector<1x128xf32>,
    return
  }
  func.func @transform_0(%arg0: i32) -> (i32, i32) {
    %c0_i32 = arith.constant 0 : i32
    %c0_i32_0 = arith.constant 0 : i32
    return %arg0, %c0_i32 : i32, i32
  }
  func.func @transform_1(%arg0: i32) -> (i32, i32) {
    %c0_i32 = arith.constant 0 : i32
    %c0_i32_0 = arith.constant 0 : i32
    %c0_i32_1 = arith.constant 0 : i32
    return %c0_i32, %c0_i32_0 : i32, i32
  }
  func.func @transform_2(%arg0: i32) -> (i32, i32) {
    %c0_i32 = arith.constant 0 : i32
    %c0_i32_0 = arith.constant 0 : i32
    %c0_i32_1 = arith.constant 0 : i32
    return %c0_i32, %c0_i32_0 : i32, i32
  }
  func.func @transform_3(%arg0: i32) -> (i32, i32) {
    %c0_i32 = arith.constant 0 : i32
    %c0_i32_0 = arith.constant 0 : i32
    %c0_i32_1 = arith.constant 0 : i32
    return %c0_i32, %c0_i32_0 : i32, i32
  }
  func.func @transform_4(%arg0: i32) -> (i32, i32) {
    %c0_i32 = arith.constant 0 : i32
    %c0_i32_0 = arith.constant 0 : i32
    %c0_i32_1 = arith.constant 0 : i32
    return %c0_i32, %c0_i32_0 : i32, i32
  }
  func.func @transform_5(%arg0: i32) -> (i32, i32) {
    %c0_i32 = arith.constant 0 : i32
    %c0_i32_0 = arith.constant 0 : i32
    %c0_i32_1 = arith.constant 0 : i32
    return %c0_i32, %c0_i32_0 : i32, i32
  }
  func.func @transform_6(%arg0: i32) -> i32 {
    %c0_i32 = arith.constant 0 : i32
    %c0_i32_0 = arith.constant 0 : i32
    return %c0_i32 : i32
  }
  func.func @transform_7(%arg0: i32) -> (i32, i32) {
    %c0_i32 = arith.constant 0 : i32
    %c0_i32_0 = arith.constant 0 : i32
    return %c0_i32, %arg0 : i32, i32
  }
}

</mosaic_0001>

<bundles_post_ra>
// kernel: critic_forward.1
= control target key start
LH: loop header
LB: loop body
LE: loop exit
PB: predicated region body
PF: predicated region fallthrough
CT: control target
= control target key end

     0   :  { %vm101_vm0 = vcmask 1043456   ;;  %vm52_vm1 = vcmask 97280   ;;  %vm922_vm2 = vmmov 1   ;;  %vm277_vm4 = vcmask 261120   ;;  %s1201_s1 = inlined_call_operand.vmem [shape: f32[12,32], index: 1, kind: input, shape index: {}]   ;;  %s1202_s0 = inlined_call_operand.vmem [shape: f32[128,12], index: 0, kind: input, shape index: {}]   ;;  %s1203_s3 = inlined_call_operand.vmem [shape: f32[32,32], index: 3, kind: input, shape index: {}]   ;;  %s1204_s2 = inlined_call_operand.vmem [shape: f32[1,32], index: 2, kind: input, shape index: {}]   ;;  %s1205_s4 = inlined_call_operand.vmem [shape: f32[1,32], index: 4, kind: input, shape index: {}]   ;;  %s1206_s5 = inlined_call_operand.vmem [shape: f32[1,32], index: 5, kind: input, shape index: {}]   ;;  %s1207_s6 = inlined_call_operand.<no memory space> [shape: f32[1], index: 6, kind: input, shape index: {}]   ;;  %s1208_s7 = inlined_call_operand.vmem [shape: f32[1,128], index: 7, kind: output, shape index: {}]  }
   0x1   :  { %v43_v0 = vld [vmem:[%s1201_s1] sm:$0xff]  ;;  %v44_v1 = vld [vmem:[%s1201_s1 + $0x8] sm:$0xf]  ;;  %vm844_vm3 = vmpackc.low %vm101_vm0, %vm922_vm2  ;;  %vm603_vm5 = vcmask 130112   ;;  %vm610_vm6 = vcmask 195712   ;;  %vm617_vm7 = vcmask 261312  }
   0x2   :  { %v843_v2 = vpack.c.bf16 %v44_v1, %v43_v0  ;;  %v27_v3 = vld [vmem:[%s1202_s0] sm:$0xff]  ;;  %v28_v4 = vld [vmem:[%s1202_s0 + $0x8] sm:$0xff]  ;;  %v29_v5 = vld [vmem:[%s1202_s0 + $0x10] sm:$0xff]  ;;  %vm624_vm8 = vcmask 326912   ;;  %vm631_vm9 = vcmask 392512   ;;  %vm638_vm10 = vcmask 458112  }
   0x3   :  { %787 = vmatprep.mubr.msk.f32.mxu0 %vm52_vm1, %v27_v3  ;;  %v30_v6 = vld [vmem:[%s1202_s0 + $0x18] sm:$0xff]  ;;  %v31_v7 = vld [vmem:[%s1202_s0 + $0x20] sm:$0xff]  ;;  %v32_v8 = vld [vmem:[%s1202_s0 + $0x28] sm:$0xff]  ;;  %vm645_vm11 = vcmask 523712   ;;  %vm652_vm12 = vcmask 589312   ;;  %vm659_vm13 = vcmask 654912  }
   0x4   :  { %845 = vmatprep.subr.msk.bf16.mxu0 %vm844_vm3, %v843_v2  ;;  %v33_v9 = vld [vmem:[%s1202_s0 + $0x30] sm:$0xff]  ;;  %v34_v10 = vld [vmem:[%s1202_s0 + $0x38] sm:$0xff]  ;;  %v35_v11 = vld [vmem:[%s1202_s0 + $0x40] sm:$0xff]  ;;  %vm666_vm14 = vcmask 720512   ;;  %vm673_vm15 = vcmask 786112   ;;  %vm680_vm0 = vcmask 851712  }
   0x5   :  { %848 = vmatpush3.bf16.msk.msra.mxu0 %vm844_vm3, %v843_v2  ;;  %v36_v12 = vld [vmem:[%s1202_s0 + $0x48] sm:$0xff]  ;;  %v37_v13 = vld [vmem:[%s1202_s0 + $0x50] sm:$0xff]  ;;  %v38_v14 = vld [vmem:[%s1202_s0 + $0x58] sm:$0xff]  ;;  %vm694_vm2 = vcmask 982912   ;;  %vm701_vm3 = vcmask 1048512  }
   0x6   :  { %v39_v15 = vld [vmem:[%s1202_s0 + $0x60] sm:$0xff]  ;;  %v40_v16 = vld [vmem:[%s1202_s0 + $0x68] sm:$0xff]  ;;  %v41_v17 = vld [vmem:[%s1202_s0 + $0x70] sm:$0xff] }
   0x7   :  { %v42_v18 = vld [vmem:[%s1202_s0 + $0x78] sm:$0xff]  ;;  %v266_v19 = vld [vmem:[%s1203_s3] sm:$0xff]  ;;  %v267_v20 = vld [vmem:[%s1203_s3 + $0x8] sm:$0xff] }
   0x8   :  { %788 = vmatmul.mubr.msk.f32.vlgmr.msra.gmra.mrb[0].mxu0 %vm52_vm1, %v28_v4  ;;  %v849_v21 = vpack.c.bf16 %v267_v20, %v266_v19  ;;  %v268_v22 = vld [vmem:[%s1203_s3 + $0x10] sm:$0xff]  ;;  %v269_v23 = vld [vmem:[%s1203_s3 + $0x18] sm:$0xff]  ;;  %v1048_v25 = vld [vmem:[%s1204_s2] ss:$0 sm:$0xff] }
   0x9   :  { %790 = vmatprep.mubr.msk.f32.mxu0 %vm52_vm1, %v29_v5  ;;  %v853_v24 = vpack.c.bf16 %v269_v23, %v268_v22  ;;  %v1096_v23 = vld [vmem:[%s1206_s5] ss:$0 sm:$0xff] }
   0xa   :  { %850 = vmatprep.subr.bf16.mxu1 %v849_v21 }
   0xb   :  { %852 = vmatpush3.bf16.msra.mxu1 %v849_v21 }
   0xc   :  { %791 = vmatmul.mubr.msk.f32.gmra.mrb[2].mxu0 %vm52_vm1, %v30_v6  ;;  %854 = vmatprep.subr.bf16.mxu1 %v853_v24 }
   0xd   :  { %793 = vmatprep.mubr.msk.f32.mxu0 %vm52_vm1, %v31_v7 }
   0xf   :  { %856 = vmatpush3.bf16.msra.mxu1 %v853_v24 }
  0x10   :  { %794 = vmatmul.mubr.msk.f32.gmra.mrb[4].mxu0 %vm52_vm1, %v32_v8 }
  0x11   :  { %796 = vmatprep.mubr.msk.f32.mxu0 %vm52_vm1, %v33_v9 }
  0x14   :  { %797 = vmatmul.mubr.msk.f32.gmra.mrb[6].mxu0 %vm52_vm1, %v34_v10  ;;  %v1085_v10 = vld [vmem:[%s1205_s4] ss:$0 sm:$0xff] }
  0x15   :  { %799 = vmatprep.mubr.msk.f32.mxu0 %vm52_vm1, %v35_v11 }
  0x18   :  { %800 = vmatmul.mubr.msk.f32.gmra.mrb[8].mxu0 %vm52_vm1, %v36_v12 }
  0x19   :  { %802 = vmatprep.mubr.msk.f32.mxu0 %vm52_vm1, %v37_v13 }
  0x1c   :  { %803 = vmatmul.mubr.msk.f32.gmra.mrb[10].mxu0 %vm52_vm1, %v38_v14 }
  0x1d   :  { %805 = vmatprep.mubr.msk.f32.mxu0 %vm52_vm1, %v39_v15 }
  0x20   :  { %806 = vmatmul.mubr.msk.f32.gmra.mrb[12].mxu0 %vm52_vm1, %v40_v16 }
  0x21   :  { %808 = vmatprep.mubr.msk.f32.mxu0 %vm52_vm1, %v41_v17 }
  0x24   :  { %809 = vmatmul.mubr.msk.f32.gmra.mrb[14].mxu0 %vm52_vm1, %v42_v18  ;;  %vm687_vm1 = vcmask 917312  }
  0xdb   :  { %v789_v26 = vpop.f32.mrb[0].mxu0 }
  0xdc   :  { %v177_v27 = vadd.f32 %v789_v26, %v1048_v25  ;;  %v171_v28 = vpop.f32.mrb[1].mxu0 }
  0xdd   :  { %v172_v29 = vadd.f32 %v1048_v25, %v171_v28 }
  0xdf   :  { %858 = vtanh.f32 %v172_v29  ;;  %v792_v30 = vpop.f32.mrb[2].mxu0 }
  0xe0   :  { %860 = vtanh.f32 %v177_v27  ;;  %v187_v31 = vadd.f32 %v792_v30, %v1048_v25  ;;  %v181_v32 = vpop.f32.mrb[3].mxu0 }
  0xe1   :  { %v182_v33 = vadd.f32 %v1048_v25, %v181_v32 }
  0xe3   :  { %862 = vtanh.f32 %v182_v33  ;;  %v795_v34 = vpop.f32.mrb[4].mxu0 }
  0xe4   :  { %864 = vtanh.f32 %v187_v31  ;;  %v197_v35 = vadd.f32 %v795_v34, %v1048_v25  ;;  %v191_v36 = vpop.f32.mrb[5].mxu0 }
  0xe5   :  { %v192_v37 = vadd.f32 %v1048_v25, %v191_v36 }
  0xe6   :  { %866 = vtanh.f32 %v197_v35 }
  0xe7   :  { %868 = vtanh.f32 %v192_v37  ;;  %v798_v38 = vpop.f32.mrb[6].mxu0 }
  0xe8   :  { %v207_v39 = vadd.f32 %v798_v38, %v1048_v25  ;;  %v201_v40 = vpop.f32.mrb[7].mxu0 }
  0xe9   :  { %v859_v41 = vpop.eup %858  ;;  %v202_v42 = vadd.f32 %v1048_v25, %v201_v40 }
  0xea   :  { %v861_v43 = vpop.eup %860  ;;  %870 = vtanh.f32 %v207_v39  ;;  %819 = vmatprep.mubr.msk.f32.mxu1 %vm277_vm4, %v859_v41 }
  0xeb   :  { %872 = vtanh.f32 %v202_v42  ;;  %v801_v44 = vpop.f32.mrb[8].mxu0  ;;  %820 = vmatmul.mubr.msk.f32.vlgmr.msra.gmra.mrb[0].mxu1 %vm277_vm4, %v861_v43 }
  0xec   :  { %v217_v45 = vadd.f32 %v801_v44, %v1048_v25  ;;  %v211_v46 = vpop.f32.mrb[9].mxu0 }
  0xed   :  { %v863_v47 = vpop.eup %862  ;;  %v212_v48 = vadd.f32 %v1048_v25, %v211_v46 }
  0xee   :  { %v865_v49 = vpop.eup %864  ;;  %874 = vtanh.f32 %v217_v45  ;;  %822 = vmatprep.mubr.msk.f32.mxu1 %vm277_vm4, %v863_v47 }
  0xef   :  { %876 = vtanh.f32 %v212_v48  ;;  %v804_v50 = vpop.f32.mrb[10].mxu0  ;;  %823 = vmatmul.mubr.msk.f32.gmra.mrb[2].mxu1 %vm277_vm4, %v865_v49 }
  0xf0   :  { %v867_v51 = vpop.eup %866  ;;  %v227_v52 = vadd.f32 %v804_v50, %v1048_v25  ;;  %v221_v53 = vpop.f32.mrb[11].mxu0 }
  0xf1   :  { %v869_v54 = vpop.eup %868  ;;  %v222_v55 = vadd.f32 %v1048_v25, %v221_v53 }
  0xf2   :  { %878 = vtanh.f32 %v227_v52  ;;  %825 = vmatprep.mubr.msk.f32.mxu1 %vm277_vm4, %v869_v54 }
  0xf3   :  { %880 = vtanh.f32 %v222_v55  ;;  %v807_v56 = vpop.f32.mrb[12].mxu0  ;;  %826 = vmatmul.mubr.msk.f32.gmra.mrb[4].mxu1 %vm277_vm4, %v867_v51 }
  0xf4   :  { %v871_v57 = vpop.eup %870  ;;  %v237_v58 = vadd.f32 %v807_v56, %v1048_v25  ;;  %v231_v59 = vpop.f32.mrb[13].mxu0 }
  0xf5   :  { %v873_v60 = vpop.eup %872  ;;  %v232_v61 = vadd.f32 %v1048_v25, %v231_v59 }
  0xf6   :  { %882 = vtanh.f32 %v237_v58  ;;  %828 = vmatprep.mubr.msk.f32.mxu1 %vm277_vm4, %v873_v60 }
  0xf7   :  { %884 = vtanh.f32 %v232_v61  ;;  %v810_v62 = vpop.f32.mrb[14].mxu0  ;;  %829 = vmatmul.mubr.msk.f32.gmra.mrb[6].mxu1 %vm277_vm4, %v871_v57 }
  0xf8   :  { %v875_v63 = vpop.eup %874  ;;  %v247_v0 = vadd.f32 %v810_v62, %v1048_v25  ;;  %v241_v1 = vpop.f32.mrb[15].mxu0 }
  0xf9   :  { %v877_v2 = vpop.eup %876  ;;  %v242_v3 = vadd.f32 %v1048_v25, %v241_v1 }
  0xfa   :  { %886 = vtanh.f32 %v247_v0  ;;  %831 = vmatprep.mubr.msk.f32.mxu1 %vm277_vm4, %v877_v2 }
  0xfb   :  { %888 = vtanh.f32 %v242_v3  ;;  %832 = vmatmul.mubr.msk.f32.gmra.mrb[8].mxu1 %vm277_vm4, %v875_v63 }
  0xfc   :  { %v879_v4 = vpop.eup %878 }
  0xfd   :  { %v881_v5 = vpop.eup %880 }
  0xfe   :  { %834 = vmatprep.mubr.msk.f32.mxu1 %vm277_vm4, %v881_v5 }
  0xff   :  { %835 = vmatmul.mubr.msk.f32.gmra.mrb[10].mxu1 %vm277_vm4, %v879_v4 }
 0x100   :  { %v883_v6 = vpop.eup %882 }
 0x101   :  { %v885_v7 = vpop.eup %884 }
 0x102   :  { %837 = vmatprep.mubr.msk.f32.mxu1 %vm277_vm4, %v885_v7 }
 0x103   :  { %838 = vmatmul.mubr.msk.f32.gmra.mrb[12].mxu1 %vm277_vm4, %v883_v6 }
 0x104   :  { %v887_v8 = vpop.eup %886 }
 0x105   :  { %v889_v9 = vpop.eup %888 }
 0x106   :  { %840 = vmatprep.mubr.msk.f32.mxu1 %vm277_vm4, %v889_v9 }
 0x107   :  { %841 = vmatmul.mubr.msk.f32.gmra.mrb[14].mxu1 %vm277_vm4, %v887_v8 }
 0x1be   :  { %v821_v11 = vpop.f32.mrb[0].mxu1 }
 0x1bf   :  { %v398_v12 = vadd.f32 %v821_v11, %v1085_v10  ;;  %v392_v13 = vpop.f32.mrb[1].mxu1 }
 0x1c0   :  { %v393_v14 = vadd.f32 %v1085_v10, %v392_v13 }
 0x1c1   :  { %890 = vtanh.f32 %v398_v12 }
 0x1c2   :  { %892 = vtanh.f32 %v393_v14  ;;  %v824_v15 = vpop.f32.mrb[2].mxu1 }
 0x1c3   :  { %v408_v16 = vadd.f32 %v824_v15, %v1085_v10  ;;  %v402_v17 = vpop.f32.mrb[3].mxu1 }
 0x1c4   :  { %v403_v18 = vadd.f32 %v1085_v10, %v402_v17 }
 0x1c5   :  { %894 = vtanh.f32 %v408_v16 }
 0x1c6   :  { %896 = vtanh.f32 %v403_v18  ;;  %v827_v19 = vpop.f32.mrb[4].mxu1 }
 0x1c7   :  { %v418_v20 = vadd.f32 %v827_v19, %v1085_v10  ;;  %v412_v21 = vpop.f32.mrb[5].mxu1 }
 0x1c8   :  { %v413_v22 = vadd.f32 %v1085_v10, %v412_v21 }
 0x1c9   :  { %898 = vtanh.f32 %v418_v20 }
 0x1ca   :  { %900 = vtanh.f32 %v413_v22  ;;  %v830_v24 = vpop.f32.mrb[6].mxu1 }
 0x1cb   :  { %v891_v25 = vpop.eup %890  ;;  %v428_v26 = vadd.f32 %v830_v24, %v1085_v10  ;;  %v422_v27 = vpop.f32.mrb[7].mxu1 }
 0x1cc   :  { %v893_v28 = vpop.eup %892  ;;  %v423_v29 = vadd.f32 %v1085_v10, %v422_v27  ;;  %v495_v30 = vmul.f32 %v891_v25, %v1096_v23 }
 0x1cd   :  { %902 = vtanh.f32 %v428_v26  ;;  %v494_v33 = vmul.f32 %v893_v28, %v1096_v23 }
 0x1ce   :  { %904 = vtanh.f32 %v423_v29  ;;  %v833_v31 = vpop.f32.mrb[8].mxu1  ;;  %v513_v32 = vsel %vm277_vm4, %v495_v30, 0.0  ;;  %v592_v29 = vlaneseq }
 0x1cf   :  { %v895_v34 = vpop.eup %894  ;;  %v438_v35 = vadd.f32 %v833_v31, %v1085_v10  ;;  %514 = vadd.xlane.f32.xlu0 %v513_v32  ;;  %v432_v36 = vpop.f32.mrb[9].mxu1  ;;  %v510_v42 = vsel %vm277_vm4, %v494_v33, 0.0 }
 0x1d0   :  { %v897_v37 = vpop.eup %896  ;;  %v433_v38 = vadd.f32 %v1085_v10, %v432_v36  ;;  %v497_v39 = vmul.f32 %v895_v34, %v1096_v23  ;;  %v1140_v30 = vand.u32 127, %v592_v29  ;;  %v1142_v32 = vshrl.u32 %v592_v29, 7 }
 0x1d1   :  { %906 = vtanh.f32 %v438_v35  ;;  %v496_v43 = vmul.f32 %v897_v37, %v1096_v23  ;;  %v1148_v34 = vstv %s1207_s6 }
 0x1d2   :  { %908 = vtanh.f32 %v433_v38  ;;  %v836_v40 = vpop.f32.mrb[10].mxu1  ;;  %v519_v41 = vsel %vm277_vm4, %v497_v39, 0.0  ;;  %v598_v33 = vadd.s32 4294967288, %v1140_v30  ;;  %v612_v35 = vadd.s32 4294967272, %v1140_v30 }
 0x1d3   :  { %v899_v44 = vpop.eup %898  ;;  %v448_v45 = vadd.f32 %v836_v40, %v1085_v10  ;;  %520 = vadd.xlane.f32.xlu1 %v519_v41  ;;  %v442_v46 = vpop.f32.mrb[11].mxu1  ;;  %511 = vadd.xlane.f32.xlu0 %v510_v42  ;;  %v516_v51 = vsel %vm277_vm4, %v496_v43, 0.0  ;;  %v596_v37 = vsub.s32 %v1140_v30, %v1142_v32  ;;  %v619_v39 = vadd.s32 4294967264, %v1140_v30 }
 0x1d4   :  { %v901_v47 = vpop.eup %900  ;;  %v443_v48 = vadd.f32 %v1085_v10, %v442_v46  ;;  %v499_v52 = vmul.f32 %v899_v44, %v1096_v23  ;;  %v601_v41 = vsub.s32 %v598_v33, %v1142_v32  ;;  %v626_v43 = vadd.s32 4294967256, %v1140_v30 }
 0x1d5   :  { %910 = vtanh.f32 %v448_v45  ;;  %v498_v49 = vmul.f32 %v901_v47, %v1096_v23  ;;  %v633_v45 = vadd.s32 4294967248, %v1140_v30  ;;  %v615_v46 = vsub.s32 %v612_v35, %v1142_v32 }
 0x1d6   :  { %912 = vtanh.f32 %v443_v48  ;;  %v839_v50 = vpop.f32.mrb[12].mxu1  ;;  %v525_v61 = vsel %vm277_vm4, %v499_v52, 0.0 }
 0x1d7   :  { %v903_v53 = vpop.eup %902  ;;  %v458_v54 = vadd.f32 %v839_v50, %v1085_v10  ;;  %v452_v55 = vpop.f32.mrb[13].mxu1  ;;  %517 = vadd.xlane.f32.xlu1 %v516_v51  ;;  %v522_v56 = vsel %vm277_vm4, %v498_v49, 0.0  ;;  %v622_v50 = vsub.s32 %v619_v39, %v1142_v32  ;;  %v689_v39 = vadd.s32 4294967184, %v1140_v30 }
 0x1d8   :  { %v905_v57 = vpop.eup %904  ;;  %v453_v58 = vadd.f32 %v1085_v10, %v452_v55  ;;  %523 = vadd.xlane.f32.xlu0 %v522_v56  ;;  %v501_v62 = vmul.f32 %v903_v53, %v1096_v23  ;;  %v629_v55 = vsub.s32 %v626_v43, %v1142_v32 }
 0x1d9   :  { %914 = vtanh.f32 %v458_v54  ;;  %v500_v59 = vmul.f32 %v905_v57, %v1096_v23  ;;  %v636_v57 = vsub.s32 %v633_v45, %v1142_v32 }
 0x1da   :  { %916 = vtanh.f32 %v453_v58  ;;  %v842_v60 = vpop.f32.mrb[14].mxu1  ;;  %v531_v6 = vsel %vm277_vm4, %v501_v62, 0.0  ;;  %v640_v58 = vadd.s32 4294967240, %v1140_v30 }
 0x1db   :  { %v907_v63 = vpop.eup %906  ;;  %v468_v0 = vadd.f32 %v842_v60, %v1085_v10  ;;  %v462_v1 = vpop.f32.mrb[15].mxu1  ;;  %526 = vadd.xlane.f32.xlu1 %v525_v61  ;;  %v528_v2 = vsel %vm277_vm4, %v500_v59, 0.0 }
 0x1dc   :  { %v909_v3 = vpop.eup %908  ;;  %v463_v4 = vadd.f32 %v1085_v10, %v462_v1  ;;  %529 = vadd.xlane.f32.xlu0 %v528_v2  ;;  %v503_v7 = vmul.f32 %v907_v63, %v1096_v23  ;;  %v647_v63 = vadd.s32 4294967232, %v1140_v30 }
 0x1dd   :  { %918 = vtanh.f32 %v468_v0  ;;  %v502_v5 = vmul.f32 %v909_v3, %v1096_v23 }
 0x1de   :  { %920 = vtanh.f32 %v463_v4  ;;  %v537_v13 = vsel %vm277_vm4, %v503_v7, 0.0  ;;  %v643_v7 = vsub.s32 %v640_v58, %v1142_v32 }
 0x1df   :  { %v911_v8 = vpop.eup %910  ;;  %532 = vadd.xlane.f32.xlu1 %v531_v6  ;;  %v534_v9 = vsel %vm277_vm4, %v502_v5, 0.0 }
 0x1e0   :  { %v913_v11 = vpop.eup %912  ;;  %535 = vadd.xlane.f32.xlu0 %v534_v9  ;;  %v505_v10 = vmul.f32 %v911_v8, %v1096_v23  ;;  %v654_v8 = vadd.s32 4294967224, %v1140_v30 }
 0x1e1   :  { %v504_v12 = vmul.f32 %v913_v11, %v1096_v23 }
 0x1e2   :  { %v543_v18 = vsel %vm277_vm4, %v505_v10, 0.0 }
 0x1e3   :  { %v915_v14 = vpop.eup %914  ;;  %538 = vadd.xlane.f32.xlu1 %v537_v13  ;;  %v540_v15 = vsel %vm277_vm4, %v504_v12, 0.0  ;;  %v650_v12 = vsub.s32 %v647_v63, %v1142_v32  ;;  %v661_v13 = vadd.s32 4294967216, %v1140_v30 }
 0x1e4   :  { %v917_v16 = vpop.eup %916  ;;  %541 = vadd.xlane.f32.xlu0 %v540_v15  ;;  %v507_v19 = vmul.f32 %v915_v14, %v1096_v23 }
 0x1e5   :  { %v506_v17 = vmul.f32 %v917_v16, %v1096_v23 }
 0x1e6   :  { %v549_v25 = vsel %vm277_vm4, %v507_v19, 0.0  ;;  %v668_v19 = vadd.s32 4294967208, %v1140_v30 }
 0x1e7   :  { %v919_v20 = vpop.eup %918  ;;  %544 = vadd.xlane.f32.xlu1 %v543_v18  ;;  %v546_v21 = vsel %vm277_vm4, %v506_v17, 0.0  ;;  %v657_v18 = vsub.s32 %v654_v8, %v1142_v32 }
 0x1e8   :  { %v921_v22 = vpop.eup %920  ;;  %547 = vadd.xlane.f32.xlu0 %v546_v21  ;;  %v509_v26 = vmul.f32 %v919_v20, %v1096_v23  ;;  %v671_v33 = vsub.s32 %v668_v19, %v1142_v32 }
 0x1e9   :  { %v508_v24 = vmul.f32 %v921_v22, %v1096_v23  ;;  %v605_v23 = vadd.s32 4294967280, %v1140_v30 }
 0x1ea   :  { %v555_v28 = vsel %vm277_vm4, %v509_v26, 0.0 }
 0x1eb   :  { %550 = vadd.xlane.f32.xlu1 %v549_v25  ;;  %v552_v27 = vsel %vm277_vm4, %v508_v24, 0.0  ;;  %v608_v44 = vsub.s32 %v605_v23, %v1142_v32  ;;  %v664_v24 = vsub.s32 %v661_v13, %v1142_v32  ;;  %v675_v25 = vadd.s32 4294967200, %v1140_v30 }
 0x1ec   :  { %553 = vadd.xlane.f32.xlu0 %v552_v27  ;;  %v682_v23 = vadd.s32 4294967192, %v1140_v30 }
 0x1ee   :  { %v685_v45 = vsub.s32 %v682_v23, %v1142_v32 }
 0x1ef   :  { %556 = vadd.xlane.f32.xlu1 %v555_v28 }
 0x25c   :  { %v515_v31 = vpop.xlane.xlu0 %514 }
 0x25d   :  { %v561_v42 = vadd.f32 %v1148_v34, %v515_v31 }
 0x25f   :  { %v602_v53 = vrot.slane %v561_v42, %v601_v41 }
 0x260   :  { %v521_v36 = vpop.xlane.xlu1 %520  ;;  %v512_v38 = vpop.xlane.xlu0 %511 }
 0x261   :  { %v560_v40 = vadd.f32 %v1148_v34, %v512_v38  ;;  %v563_v47 = vadd.f32 %v1148_v34, %v521_v36  ;;  %v678_v38 = vsub.s32 %v675_v25, %v1142_v32 }
 0x263   :  { %v597_v48 = vrot.slane %v560_v40, %v596_v37  ;;  %v616_v59 = vrot.slane %v563_v47, %v615_v46  ;;  %v696_v46 = vadd.s32 4294967176, %v1140_v30 }
 0x264   :  { %v518_v49 = vpop.xlane.xlu1 %517 }
 0x265   :  { %v562_v51 = vadd.f32 %v1148_v34, %v518_v49  ;;  %v524_v52 = vpop.xlane.xlu0 %523  ;;  %v604_v60 = vsel %vm603_vm5, %v602_v53, %v597_v48 }
 0x266   :  { %v564_v54 = vadd.f32 %v1148_v34, %v524_v52 }
 0x267   :  { %v609_v56 = vrot.slane %v562_v51, %v608_v44 }
 0x268   :  { %v623_v61 = vrot.slane %v564_v54, %v622_v50  ;;  %v527_v62 = vpop.xlane.xlu1 %526  ;;  %v692_v50 = vsub.s32 %v689_v39, %v1142_v32 }
 0x269   :  { %v611_v0 = vsel %vm610_vm6, %v609_v56, %v604_v60  ;;  %v565_v1 = vadd.f32 %v1148_v34, %v527_v62  ;;  %v530_v2 = vpop.xlane.xlu0 %529  ;;  %v699_v56 = vsub.s32 %v696_v46, %v1142_v32 }
 0x26a   :  { %v618_v3 = vsel %vm617_vm7, %v616_v59, %v611_v0  ;;  %v566_v4 = vadd.f32 %v1148_v34, %v530_v2 }
 0x26b   :  { %v625_v5 = vsel %vm624_vm8, %v623_v61, %v618_v3  ;;  %v630_v6 = vrot.slane %v565_v1, %v629_v55 }
 0x26c   :  { %v637_v9 = vrot.slane %v566_v4, %v636_v57  ;;  %v533_v11 = vpop.xlane.xlu1 %532 }
 0x26d   :  { %v632_v10 = vsel %vm631_vm9, %v630_v6, %v625_v5  ;;  %v567_v14 = vadd.f32 %v1148_v34, %v533_v11  ;;  %v536_v15 = vpop.xlane.xlu0 %535 }
 0x26e   :  { %v568_v16 = vadd.f32 %v1148_v34, %v536_v15  ;;  %v639_v20 = vsel %vm638_vm10, %v637_v9, %v632_v10 }
 0x26f   :  { %v644_v17 = vrot.slane %v567_v14, %v643_v7 }
 0x270   :  { %v651_v21 = vrot.slane %v568_v16, %v650_v12  ;;  %v539_v22 = vpop.xlane.xlu1 %538 }
 0x271   :  { %v646_v26 = vsel %vm645_vm11, %v644_v17, %v639_v20  ;;  %v569_v27 = vadd.f32 %v1148_v34, %v539_v22  ;;  %v542_v28 = vpop.xlane.xlu0 %541 }
 0x272   :  { %v570_v29 = vadd.f32 %v1148_v34, %v542_v28  ;;  %v653_v35 = vsel %vm652_vm12, %v651_v21, %v646_v26 }
 0x273   :  { %v658_v31 = vrot.slane %v569_v27, %v657_v18 }
 0x274   :  { %v665_v36 = vrot.slane %v570_v29, %v664_v24  ;;  %v545_v37 = vpop.xlane.xlu1 %544 }
 0x275   :  { %v660_v40 = vsel %vm659_vm13, %v658_v31, %v653_v35  ;;  %v571_v41 = vadd.f32 %v1148_v34, %v545_v37  ;;  %v548_v42 = vpop.xlane.xlu0 %547 }
 0x276   :  { %v572_v43 = vadd.f32 %v1148_v34, %v548_v42  ;;  %v667_v47 = vsel %vm666_vm14, %v665_v36, %v660_v40 }
 0x277   :  { %v672_v44 = vrot.slane %v571_v41, %v671_v33 }
 0x278   :  { %v679_v48 = vrot.slane %v572_v43, %v678_v38  ;;  %v551_v49 = vpop.xlane.xlu1 %550 }
 0x279   :  { %v674_v51 = vsel %vm673_vm15, %v672_v44, %v667_v47  ;;  %v573_v52 = vadd.f32 %v1148_v34, %v551_v49  ;;  %v554_v53 = vpop.xlane.xlu0 %553 }
 0x27a   :  { %v574_v54 = vadd.f32 %v1148_v34, %v554_v53  ;;  %v681_v57 = vsel %vm680_vm0, %v679_v48, %v674_v51 }
 0x27b   :  { %v686_v55 = vrot.slane %v573_v52, %v685_v45 }
 0x27c   :  { %v693_v58 = vrot.slane %v574_v54, %v692_v50  ;;  %v557_v59 = vpop.xlane.xlu1 %556 }
 0x27d   :  { %v688_v30 = vsel %vm687_vm1, %v686_v55, %v681_v57  ;;  %v575_v60 = vadd.f32 %v1148_v34, %v557_v59 }
 0x27e   :  { %v695_v62 = vsel %vm694_vm2, %v693_v58, %v688_v30 }
 0x27f   :  { %v700_v61 = vrot.slane %v575_v60, %v699_v56 }
 0x281   :  { %v702_v63 = vsel %vm701_vm3, %v700_v61, %v695_v62 }
 0x282   :  { %704 = vst [vmem:[%s1208_s7] sm:$0x1] %v702_v63 }

</bundles_post_ra>
